<compile_context>
chip_gen: v7x
topology: tpu7x:2x2x1
jax: 0.10.0
libtpu: 0.0.40
codegen_flags: <defaults>
</compile_context>

<pallas_src>
import jax
import jax.numpy as jnp
from jax.experimental import pallas as pl
from jax.experimental.pallas import tpu as pltpu


# ----------------------------------------------------------------------------
# Fused kernel: ChildSumTreeLSTM chain recurrence (leaf -> root) + head MLP.
# ----------------------------------------------------------------------------
def _structure_encoder_kernel(embed2d_ref, epre2d_ref,
                              wel_ref, bel_ref, wgh_ref, wgx_ref, bg_ref,
                              w12_ref, b12_ref, w3_ref, b3_ref, w4_ref, b4_ref,
                              y_ref):
    NB, H = epre2d_ref.shape
    B, _ = y_ref.shape
    N = NB // B

    # --- hoisted off the serial chain: two batched MXU matmuls for all steps ---
    # input -> gates contribution (includes all gate biases, zero at init)
    embed_gates = (jnp.dot(embed2d_ref[...], wgx_ref[...],
                           preferred_element_type=jnp.float32)
                   + bg_ref[...])                                   # (N*B, 4H)
    # edge_linear(src*dst + edge_one_hot_liner(edge_type)) for all steps
    edge_w_all = (jnp.dot(epre2d_ref[...], wel_ref[...],
                          preferred_element_type=jnp.float32)
                  + bel_ref[...])                                   # (N*B, H)

    wgh = wgh_ref[...]                                              # (H, 4H)

    h = jnp.zeros((B, H), jnp.float32)
    c = jnp.zeros((B, H), jnp.float32)

    # N is small and static: unroll so the LLO scheduler sees across steps and
    # (h, c) never round-trip through VMEM. Serial work per step = one tiny
    # (B,H)@(H,4H) matmul + elementwise gates.
    for s in range(N):
        rows = slice(s * B, (s + 1) * B)
        # single-child chain: message h * edge_w (zero at the leaf since h=0)
        h_msg = h * edge_w_all[rows, :]
        gates = (jnp.dot(h_msg, wgh, preferred_element_type=jnp.float32)
                 + embed_gates[rows, :])                            # (B, 4H)
        f = jax.nn.sigmoid(gates[:, 0 * H:1 * H])
        i = jax.nn.sigmoid(gates[:, 1 * H:2 * H])
        u = jnp.tanh(gates[:, 2 * H:3 * H])
        o = jax.nn.sigmoid(gates[:, 3 * H:4 * H])
        c = i * u + f * c              # c_tilde = f * c_child (0 at leaf)
        h = o * jnp.tanh(c)

    # --- fused head MLP (dropout = identity at eval), W1|W2 stacked ---
    hy = jnp.dot(h, w12_ref[...], preferred_element_type=jnp.float32) + b12_ref[...]
    y1 = jnp.tanh(hy[:, :H])                      # tanh(linear(h))
    t = jnp.maximum(hy[:, H:], 0.0)               # relu(linear2(h))
    y2 = jnp.dot(t, w3_ref[...], preferred_element_type=jnp.float32) + b3_ref[...]
    y_ref[...] = jnp.maximum(
        jnp.dot(y1 + y2, w4_ref[...], preferred_element_type=jnp.float32)
        + b4_ref[...], 0.0)


def structure_encoder_fused(embed_seq, epre_seq, w_el, b_el, w_g, b_g,
                            w12, b12, w3, b3, w4, b4):
    N, B, X = embed_seq.shape
    H = epre_seq.shape[-1]
    assert X == H, "StructureEncoder requires x_size == h_size"
    embed2d = embed_seq.reshape(N * B, X)        # step-major rows (step, batch)
    epre2d = epre_seq.reshape(N * B, H)
    wg_h = w_g[:H, :]                            # gate weights for the h-part
    wg_x = w_g[H:, :]                            # gate weights for the embed-part
    operands = (embed2d, epre2d, w_el, b_el, wg_h, wg_x, b_g,
                w12, b12, w3, b3, w4, b4)
    in_specs = [pl.BlockSpec(a.shape, (lambda i, nd=a.ndim: (0,) * nd))
                for a in operands]
    return pl.pallas_call(
        _structure_encoder_kernel,
        out_shape=jax.ShapeDtypeStruct((B, H), jnp.float32),
        grid=(1,),
        in_specs=in_specs,
        out_specs=pl.BlockSpec((B, H), lambda i: (0, 0)),
        compiler_params=pltpu.CompilerParams(dimension_semantics=("arbitrary",)),
    )(*operands)


# ----------------------------------------------------------------------------
# Glue: deterministic parameters, VocabGraph-lite, edge-message preprocessing.
# ----------------------------------------------------------------------------
def init_params(key, X, H, atom_symbol_size=10, atom_emb_dim=4, heads=4):
    hid = X // 2
    ks = jax.random.split(key, 16)
    s = 0.1
    p = {}
    # VocabGraph
    p['atom_emb'] = s * jax.random.normal(ks[0], (atom_symbol_size, atom_emb_dim), jnp.float32)
    p['w_l1'] = s * jax.random.normal(ks[1], (atom_emb_dim + 3, atom_emb_dim + 3), jnp.float32)
    p['b_l1'] = jnp.zeros((atom_emb_dim + 3,), jnp.float32)
    p['w_gat'] = s * jax.random.normal(ks[2], (heads, atom_emb_dim + 3, hid), jnp.float32)
    p['a_src'] = s * jax.random.normal(ks[3], (heads, hid), jnp.float32)
    p['a_dst'] = s * jax.random.normal(ks[4], (heads, hid), jnp.float32)
    p['w_gout'] = s * jax.random.normal(ks[5], (heads * hid, X), jnp.float32)
    p['b_gout'] = jnp.zeros((X,), jnp.float32)
    # ChildSumTreeLSTMCell
    p['w_eo'] = s * jax.random.normal(ks[6], (3, H), jnp.float32)   # edge_one_hot_liner
    p['b_eo'] = jnp.zeros((H,), jnp.float32)
    p['w_el'] = s * jax.random.normal(ks[7], (H, H), jnp.float32)   # edge_linear
    p['b_el'] = jnp.zeros((1, H), jnp.float32)
    p['w_g'] = s * jax.random.normal(ks[8], (H + X, 4 * H), jnp.float32)  # [W_f|W_i|W_u|W_o]
    p['b_g'] = jnp.zeros((1, 4 * H), jnp.float32)  # linear biases + extra b_f/b_i/b_u/b_o (zeros)
    # Head
    for idx, name in enumerate(('1', '2', '3', '4')):
        p['w' + name] = s * jax.random.normal(ks[9 + idx], (H, H), jnp.float32)
        p['b' + name] = jnp.zeros((1, H), jnp.float32)
    return p


def structure_encoder_forward(params, node_embed, graph_node_ids, frag_bond, joints):
    """node_embed (B,N,X), graph_node_ids (B,N,A) int, frag_bond (B,N,A,3), joints (B,N,4) int."""
    B, N, X = node_embed.shape
    H = params['w_el'].shape[0]
    assert X == H, "StructureEncoder requires x_size == h_size"

    # --- VocabGraph (glue): embedding + linear1 + dense GAT approximation + output_layer ---
    # TODO(synk): PyG GATConv sparse edge_index attention — approximated with dense
    # all-pairs multi-head attention (graphs here are tiny, fixed-size A).
    emb = params['atom_emb'][graph_node_ids]                         # (B,N,A,E)
    x0 = jnp.concatenate([emb, frag_bond], axis=-1)                  # (B,N,A,E+3)
    x1 = x0 @ params['w_l1'] + params['b_l1']
    hgat = jnp.einsum('bnaf,hfd->bnahd', x1, params['w_gat'])        # (B,N,A,heads,hid)
    e_src = jnp.sum(hgat * params['a_src'], axis=-1)                 # (B,N,A,heads)
    e_dst = jnp.sum(hgat * params['a_dst'], axis=-1)
    e = jax.nn.leaky_relu(e_src[:, :, :, None, :] + e_dst[:, :, None, :, :], 0.2)
    alpha = jax.nn.softmax(e, axis=3)
    agg = jnp.einsum('bnijh,bnjhd->bnihd', alpha, hgat)
    agg = agg.reshape(B, N, agg.shape[2], -1)                        # (B,N,A,heads*hid)
    feat = agg @ params['w_gout'] + params['b_gout']                 # (B,N,A,X)

    # --- vectorized edge-message preprocessing (all steps in one gather + matmul) ---
    # TODO(synk): prop_nodes_topo's general topological scheduling replaced by a
    # deterministic leaf->root chain (node n's single child is node n+1).
    steps = jnp.arange(1, N)             # recurrence steps that carry a child msg
    dst_nodes = N - 1 - steps            # node updated at step s
    src_nodes = dst_nodes + 1            # its single child on the chain
    barange = jnp.arange(B)
    jt = joints[:, src_nodes]                                        # (B, N-1, 4)
    src_f = feat[barange[:, None], src_nodes[None, :], jt[..., 2]]   # (B, N-1, X)
    dst_f = feat[barange[:, None], dst_nodes[None, :], jt[..., 1]]   # (B, N-1, X)
    # NOTE: bond types outside {1,2,3} would yield an all-zero one-hot (input contract).
    eoh = jax.nn.one_hot(jt[..., 3] - 1, 3, dtype=jnp.float32)       # (B, N-1, 3)
    epre = src_f * dst_f + eoh @ params['w_eo'] + params['b_eo']     # (B, N-1, H)
    epre_seq = jnp.concatenate(
        [jnp.zeros((1, B, H), jnp.float32), jnp.transpose(epre, (1, 0, 2))], axis=0)
    embed_seq = jnp.transpose(node_embed[:, ::-1, :], (1, 0, 2))     # (N,B,X) leaf->root

    # --- fused Pallas hot path: TreeLSTM recurrence + head MLP ---
    w12 = jnp.concatenate([params['w1'], params['w2']], axis=1)      # (H, 2H)
    b12 = jnp.concatenate([params['b1'], params['b2']], axis=1)      # (1, 2H)
    return structure_encoder_fused(
        embed_seq, epre_seq, params['w_el'], params['b_el'],
        params['w_g'], params['b_g'], w12, b12,
        params['w3'], params['b3'], params['w4'], params['b4'])


if __name__ == "__main__":
    B, N, X, H, A = 2, 8, 32, 32, 4     # X must equal H (see note at top)
    ATOMS = 10
    key = jax.random.PRNGKey(0)
    kp, k1, k2, k3, k4, k5, k6 = jax.random.split(key, 7)

    params = init_params(kp, X, H, atom_symbol_size=ATOMS)
    node_embed = jax.random.normal(k1, (B, N, X), jnp.float32)
    graph_node_ids = jax.random.randint(k2, (B, N, A), 0, ATOMS)
    frag_bond = jax.random.normal(k3, (B, N, A, 3), jnp.float32)
    joints = jnp.stack([
        jnp.zeros((B, N), jnp.int32),
        jax.random.randint(k4, (B, N), 0, A),   # atom idx in dst graph
        jax.random.randint(k5, (B, N), 0, A),   # atom idx in src graph
        jax.random.randint(k6, (B, N), 1, 4),   # bond type in {1,2,3}
    ], axis=-1)

    forward = jax.jit(structure_encoder_forward)
    y = forward(params, node_embed, graph_node_ids, frag_bond, joints)
    y = jax.block_until_ready(y)
    assert y.shape == (B, H) and y.dtype == jnp.float32
    print("KERNEL_OK")
</pallas_src>

<mosaic_0001>
module attributes {stable_mosaic.version = 11 : i64} {
  func.func @_structure_encoder_kernel(%arg0: i32, %arg1: memref<16x32xf32, #tpu.memory_space<vmem>>, %arg2: memref<16x32xf32, #tpu.memory_space<vmem>>, %arg3: memref<32x32xf32, #tpu.memory_space<vmem>>, %arg4: memref<1x32xf32, #tpu.memory_space<vmem>>, %arg5: memref<32x128xf32, #tpu.memory_space<vmem>>, %arg6: memref<32x128xf32, #tpu.memory_space<vmem>>, %arg7: memref<1x128xf32, #tpu.memory_space<vmem>>, %arg8: memref<32x64xf32, #tpu.memory_space<vmem>>, %arg9: memref<1x64xf32, #tpu.memory_space<vmem>>, %arg10: memref<32x32xf32, #tpu.memory_space<vmem>>, %arg11: memref<1x32xf32, #tpu.memory_space<vmem>>, %arg12: memref<32x32xf32, #tpu.memory_space<vmem>>, %arg13: memref<1x32xf32, #tpu.memory_space<vmem>>, %arg14: memref<2x32xf32, #tpu.memory_space<vmem>>) attributes {dimension_semantics = [#tpu.dimension_semantics<arbitrary>], iteration_bounds = array<i64: 1>, scalar_prefetch = 0 : i64, scratch_operands = 0 : i64, tpu.core_type = #tpu.core_type<tc>, window_params = [{pipeline_mode = #tpu.pipeline_mode<synchronous>, transform_indices = @transform_0, window_bounds = array<i64: 16, 32>}, {pipeline_mode = #tpu.pipeline_mode<synchronous>, transform_indices = @transform_1, window_bounds = array<i64: 16, 32>}, {pipeline_mode = #tpu.pipeline_mode<synchronous>, transform_indices = @transform_2, window_bounds = array<i64: 32, 32>}, {pipeline_mode = #tpu.pipeline_mode<synchronous>, transform_indices = @transform_3, window_bounds = array<i64: 1, 32>}, {pipeline_mode = #tpu.pipeline_mode<synchronous>, transform_indices = @transform_4, window_bounds = array<i64: 32, 128>}, {pipeline_mode = #tpu.pipeline_mode<synchronous>, transform_indices = @transform_5, window_bounds = array<i64: 32, 128>}, {pipeline_mode = #tpu.pipeline_mode<synchronous>, transform_indices = @transform_6, window_bounds = array<i64: 1, 128>}, {pipeline_mode = #tpu.pipeline_mode<synchronous>, transform_indices = @transform_7, window_bounds = array<i64: 32, 64>}, {pipeline_mode = #tpu.pipeline_mode<synchronous>, transform_indices = @transform_8, window_bounds = array<i64: 1, 64>}, {pipeline_mode = #tpu.pipeline_mode<synchronous>, transform_indices = @transform_9, window_bounds = array<i64: 32, 32>}, {pipeline_mode = #tpu.pipeline_mode<synchronous>, transform_indices = @transform_10, window_bounds = array<i64: 1, 32>}, {pipeline_mode = #tpu.pipeline_mode<synchronous>, transform_indices = @transform_11, window_bounds = array<i64: 32, 32>}, {pipeline_mode = #tpu.pipeline_mode<synchronous>, transform_indices = @transform_12, window_bounds = array<i64: 1, 32>}, {pipeline_mode = #tpu.pipeline_mode<synchronous>, transform_indices = @transform_13, window_bounds = array<i64: 2, 32>}]} {
    %c0 = arith.constant 0 : index
    %c0_0 = arith.constant 0 : index
    %0 = vector.load %arg1[%c0, %c0_0] : memref<16x32xf32, #tpu.memory_space<vmem>>, vector<16x32xf32>
    %c0_1 = arith.constant 0 : index
    %c0_2 = arith.constant 0 : index
    %1 = vector.load %arg6[%c0_1, %c0_2] : memref<32x128xf32, #tpu.memory_space<vmem>>, vector<32x128xf32>
    %cst = arith.constant dense<0.000000e+00> : vector<16x128xf32>
    %2 = tpu.matmul %0, %1, %cst {dimension_numbers = #tpu.dot_dimension_numbers<[1], [0], [0], [1], [0, 0, 1, 1], [], []>} : vector<16x32xf32>, vector<32x128xf32>, vector<16x128xf32> -> vector<16x128xf32>
    %c0_3 = arith.constant 0 : index
    %c0_4 = arith.constant 0 : index
    %3 = vector.load %arg7[%c0_3, %c0_4] : memref<1x128xf32, #tpu.memory_space<vmem>>, vector<1x128xf32>
    %4 = vector.broadcast %3 : vector<1x128xf32> to vector<16x128xf32>
    %5 = arith.addf %2, %4 : vector<16x128xf32>
    %c0_5 = arith.constant 0 : index
    %c0_6 = arith.constant 0 : index
    %6 = vector.load %arg2[%c0_5, %c0_6] : memref<16x32xf32, #tpu.memory_space<vmem>>, vector<16x32xf32>
    %c0_7 = arith.constant 0 : index
    %c0_8 = arith.constant 0 : index
    %7 = vector.load %arg3[%c0_7, %c0_8] : memref<32x32xf32, #tpu.memory_space<vmem>>, vector<32x32xf32>
    %cst_9 = arith.constant dense<0.000000e+00> : vector<16x32xf32>
    %8 = tpu.matmul %6, %7, %cst_9 {dimension_numbers = #tpu.dot_dimension_numbers<[1], [0], [0], [1], [0, 0, 1, 1], [], []>} : vector<16x32xf32>, vector<32x32xf32>, vector<16x32xf32> -> vector<16x32xf32>
    %c0_10 = arith.constant 0 : index
    %c0_11 = arith.constant 0 : index
    %9 = vector.load %arg4[%c0_10, %c0_11] : memref<1x32xf32, #tpu.memory_space<vmem>>, vector<1x32xf32>
    %10 = vector.broadcast %9 : vector<1x32xf32> to vector<16x32xf32>
    %11 = arith.addf %8, %10 : vector<16x32xf32>
    %c0_12 = arith.constant 0 : index
    %c0_13 = arith.constant 0 : index
    %12 = vector.load %arg5[%c0_12, %c0_13] : memref<32x128xf32, #tpu.memory_space<vmem>>, vector<32x128xf32>
    %cst_14 = arith.constant 0.000000e+00 : f32
    %13 = vector.broadcast %cst_14 : f32 to vector<2x32xf32>
    %cst_15 = arith.constant 0.000000e+00 : f32
    %14 = vector.broadcast %cst_15 : f32 to vector<2x32xf32>
    %15 = vector.extract_strided_slice %11 {offsets = [0, 0], sizes = [2, 32], strides = [1, 1]} : vector<16x32xf32> to vector<2x32xf32>
    %16 = arith.mulf %13, %15 : vector<2x32xf32>
    %cst_16 = arith.constant dense<0.000000e+00> : vector<2x128xf32>
    %17 = tpu.matmul %16, %12, %cst_16 {dimension_numbers = #tpu.dot_dimension_numbers<[1], [0], [0], [1], [0, 0, 1, 1], [], []>} : vector<2x32xf32>, vector<32x128xf32>, vector<2x128xf32> -> vector<2x128xf32>
    %18 = vector.extract_strided_slice %5 {offsets = [0, 0], sizes = [2, 128], strides = [1, 1]} : vector<16x128xf32> to vector<2x128xf32>
    %19 = arith.addf %17, %18 : vector<2x128xf32>
    %20 = vector.extract_strided_slice %19 {offsets = [0, 0], sizes = [2, 32], strides = [1, 1]} : vector<2x128xf32> to vector<2x32xf32>
    %21 = arith.negf %20 : vector<2x32xf32>
    %22 = math.exp %21 : vector<2x32xf32>
    %cst_17 = arith.constant 1.000000e+00 : f32
    %23 = vector.broadcast %cst_17 : f32 to vector<2x32xf32>
    %24 = arith.addf %23, %22 : vector<2x32xf32>
    %25 = arith.divf %23, %24 : vector<2x32xf32>
    %26 = vector.extract_strided_slice %19 {offsets = [0, 32], sizes = [2, 32], strides = [1, 1]} : vector<2x128xf32> to vector<2x32xf32>
    %27 = arith.negf %26 : vector<2x32xf32>
    %28 = math.exp %27 : vector<2x32xf32>
    %cst_18 = arith.constant 1.000000e+00 : f32
    %29 = vector.broadcast %cst_18 : f32 to vector<2x32xf32>
    %30 = arith.addf %29, %28 : vector<2x32xf32>
    %31 = arith.divf %29, %30 : vector<2x32xf32>
    %32 = vector.extract_strided_slice %19 {offsets = [0, 64], sizes = [2, 32], strides = [1, 1]} : vector<2x128xf32> to vector<2x32xf32>
    %33 = math.tanh %32 : vector<2x32xf32>
    %34 = vector.extract_strided_slice %19 {offsets = [0, 96], sizes = [2, 32], strides = [1, 1]} : vector<2x128xf32> to vector<2x32xf32>
    %35 = arith.negf %34 : vector<2x32xf32>
    %36 = math.exp %35 : vector<2x32xf32>
    %cst_19 = arith.constant 1.000000e+00 : f32
    %37 = vector.broadcast %cst_19 : f32 to vector<2x32xf32>
    %38 = arith.addf %37, %36 : vector<2x32xf32>
    %39 = arith.divf %37, %38 : vector<2x32xf32>
    %40 = arith.mulf %31, %33 : vector<2x32xf32>
    %41 = arith.mulf %25, %14 : vector<2x32xf32>
    %42 = arith.addf %40, %41 : vector<2x32xf32>
    %43 = math.tanh %42 : vector<2x32xf32>
    %44 = arith.mulf %39, %43 : vector<2x32xf32>
    %45 = vector.extract_strided_slice %11 {offsets = [2, 0], sizes = [2, 32], strides = [1, 1]} : vector<16x32xf32> to vector<2x32xf32>
    %46 = arith.mulf %44, %45 : vector<2x32xf32>
    %cst_20 = arith.constant dense<0.000000e+00> : vector<2x128xf32>
    %47 = tpu.matmul %46, %12, %cst_20 {dimension_numbers = #tpu.dot_dimension_numbers<[1], [0], [0], [1], [0, 0, 1, 1], [], []>} : vector<2x32xf32>, vector<32x128xf32>, vector<2x128xf32> -> vector<2x128xf32>
    %48 = vector.extract_strided_slice %5 {offsets = [2, 0], sizes = [2, 128], strides = [1, 1]} : vector<16x128xf32> to vector<2x128xf32>
    %49 = arith.addf %47, %48 : vector<2x128xf32>
    %50 = vector.extract_strided_slice %49 {offsets = [0, 0], sizes = [2, 32], strides = [1, 1]} : vector<2x128xf32> to vector<2x32xf32>
    %51 = arith.negf %50 : vector<2x32xf32>
    %52 = math.exp %51 : vector<2x32xf32>
    %cst_21 = arith.constant 1.000000e+00 : f32
    %53 = vector.broadcast %cst_21 : f32 to vector<2x32xf32>
    %54 = arith.addf %53, %52 : vector<2x32xf32>
    %55 = arith.divf %53, %54 : vector<2x32xf32>
    %56 = vector.extract_strided_slice %49 {offsets = [0, 32], sizes = [2, 32], strides = [1, 1]} : vector<2x128xf32> to vector<2x32xf32>
    %57 = arith.negf %56 : vector<2x32xf32>
    %58 = math.exp %57 : vector<2x32xf32>
    %cst_22 = arith.constant 1.000000e+00 : f32
    %59 = vector.broadcast %cst_22 : f32 to vector<2x32xf32>
    %60 = arith.addf %59, %58 : vector<2x32xf32>
    %61 = arith.divf %59, %60 : vector<2x32xf32>
    %62 = vector.extract_strided_slice %49 {offsets = [0, 64], sizes = [2, 32], strides = [1, 1]} : vector<2x128xf32> to vector<2x32xf32>
    %63 = math.tanh %62 : vector<2x32xf32>
    %64 = vector.extract_strided_slice %49 {offsets = [0, 96], sizes = [2, 32], strides = [1, 1]} : vector<2x128xf32> to vector<2x32xf32>
    %65 = arith.negf %64 : vector<2x32xf32>
    %66 = math.exp %65 : vector<2x32xf32>
    %cst_23 = arith.constant 1.000000e+00 : f32
    %67 = vector.broadcast %cst_23 : f32 to vector<2x32xf32>
    %68 = arith.addf %67, %66 : vector<2x32xf32>
    %69 = arith.divf %67, %68 : vector<2x32xf32>
    %70 = arith.mulf %61, %63 : vector<2x32xf32>
    %71 = arith.mulf %55, %42 : vector<2x32xf32>
    %72 = arith.addf %70, %71 : vector<2x32xf32>
    %73 = math.tanh %72 : vector<2x32xf32>
    %74 = arith.mulf %69, %73 : vector<2x32xf32>
    %75 = vector.extract_strided_slice %11 {offsets = [4, 0], sizes = [2, 32], strides = [1, 1]} : vector<16x32xf32> to vector<2x32xf32>
    %76 = arith.mulf %74, %75 : vector<2x32xf32>
    %cst_24 = arith.constant dense<0.000000e+00> : vector<2x128xf32>
    %77 = tpu.matmul %76, %12, %cst_24 {dimension_numbers = #tpu.dot_dimension_numbers<[1], [0], [0], [1], [0, 0, 1, 1], [], []>} : vector<2x32xf32>, vector<32x128xf32>, vector<2x128xf32> -> vector<2x128xf32>
    %78 = vector.extract_strided_slice %5 {offsets = [4, 0], sizes = [2, 128], strides = [1, 1]} : vector<16x128xf32> to vector<2x128xf32>
    %79 = arith.addf %77, %78 : vector<2x128xf32>
    %80 = vector.extract_strided_slice %79 {offsets = [0, 0], sizes = [2, 32], strides = [1, 1]} : vector<2x128xf32> to vector<2x32xf32>
    %81 = arith.negf %80 : vector<2x32xf32>
    %82 = math.exp %81 : vector<2x32xf32>
    %cst_25 = arith.constant 1.000000e+00 : f32
    %83 = vector.broadcast %cst_25 : f32 to vector<2x32xf32>
    %84 = arith.addf %83, %82 : vector<2x32xf32>
    %85 = arith.divf %83, %84 : vector<2x32xf32>
    %86 = vector.extract_strided_slice %79 {offsets = [0, 32], sizes = [2, 32], strides = [1, 1]} : vector<2x128xf32> to vector<2x32xf32>
    %87 = arith.negf %86 : vector<2x32xf32>
    %88 = math.exp %87 : vector<2x32xf32>
    %cst_26 = arith.constant 1.000000e+00 : f32
    %89 = vector.broadcast %cst_26 : f32 to vector<2x32xf32>
    %90 = arith.addf %89, %88 : vector<2x32xf32>
    %91 = arith.divf %89, %90 : vector<2x32xf32>
    %92 = vector.extract_strided_slice %79 {offsets = [0, 64], sizes = [2, 32], strides = [1, 1]} : vector<2x128xf32> to vector<2x32xf32>
    %93 = math.tanh %92 : vector<2x32xf32>
    %94 = vector.extract_strided_slice %79 {offsets = [0, 96], sizes = [2, 32], strides = [1, 1]} : vector<2x128xf32> to vector<2x32xf32>
    %95 = arith.negf %94 : vector<2x32xf32>
    %96 = math.exp %95 : vector<2x32xf32>
    %cst_27 = arith.constant 1.000000e+00 : f32
    %97 = vector.broadcast %cst_27 : f32 to vector<2x32xf32>
    %98 = arith.addf %97, %96 : vector<2x32xf32>
    %99 = arith.divf %97, %98 : vector<2x32xf32>
    %100 = arith.mulf %91, %93 : vector<2x32xf32>
    %101 = arith.mulf %85, %72 : vector<2x32xf32>
    %102 = arith.addf %100, %101 : vector<2x32xf32>
    %103 = math.tanh %102 : vector<2x32xf32>
    %104 = arith.mulf %99, %103 : vector<2x32xf32>
    %105 = vector.extract_strided_slice %11 {offsets = [6, 0], sizes = [2, 32], strides = [1, 1]} : vector<16x32xf32> to vector<2x32xf32>
    %106 = arith.mulf %104, %105 : vector<2x32xf32>
    %cst_28 = arith.constant dense<0.000000e+00> : vector<2x128xf32>
    %107 = tpu.matmul %106, %12, %cst_28 {dimension_numbers = #tpu.dot_dimension_numbers<[1], [0], [0], [1], [0, 0, 1, 1], [], []>} : vector<2x32xf32>, vector<32x128xf32>, vector<2x128xf32> -> vector<2x128xf32>
    %108 = vector.extract_strided_slice %5 {offsets = [6, 0], sizes = [2, 128], strides = [1, 1]} : vector<16x128xf32> to vector<2x128xf32>
    %109 = arith.addf %107, %108 : vector<2x128xf32>
    %110 = vector.extract_strided_slice %109 {offsets = [0, 0], sizes = [2, 32], strides = [1, 1]} : vector<2x128xf32> to vector<2x32xf32>
    %111 = arith.negf %110 : vector<2x32xf32>
    %112 = math.exp %111 : vector<2x32xf32>
    %cst_29 = arith.constant 1.000000e+00 : f32
    %113 = vector.broadcast %cst_29 : f32 to vector<2x32xf32>
    %114 = arith.addf %113, %112 : vector<2x32xf32>
    %115 = arith.divf %113, %114 : vector<2x32xf32>
    %116 = vector.extract_strided_slice %109 {offsets = [0, 32], sizes = [2, 32], strides = [1, 1]} : vector<2x128xf32> to vector<2x32xf32>
    %117 = arith.negf %116 : vector<2x32xf32>
    %118 = math.exp %117 : vector<2x32xf32>
    %cst_30 = arith.constant 1.000000e+00 : f32
    %119 = vector.broadcast %cst_30 : f32 to vector<2x32xf32>
    %120 = arith.addf %119, %118 : vector<2x32xf32>
    %121 = arith.divf %119, %120 : vector<2x32xf32>
    %122 = vector.extract_strided_slice %109 {offsets = [0, 64], sizes = [2, 32], strides = [1, 1]} : vector<2x128xf32> to vector<2x32xf32>
    %123 = math.tanh %122 : vector<2x32xf32>
    %124 = vector.extract_strided_slice %109 {offsets = [0, 96], sizes = [2, 32], strides = [1, 1]} : vector<2x128xf32> to vector<2x32xf32>
    %125 = arith.negf %124 : vector<2x32xf32>
    %126 = math.exp %125 : vector<2x32xf32>
    %cst_31 = arith.constant 1.000000e+00 : f32
    %127 = vector.broadcast %cst_31 : f32 to vector<2x32xf32>
    %128 = arith.addf %127, %126 : vector<2x32xf32>
    %129 = arith.divf %127, %128 : vector<2x32xf32>
    %130 = arith.mulf %121, %123 : vector<2x32xf32>
    %131 = arith.mulf %115, %102 : vector<2x32xf32>
    %132 = arith.addf %130, %131 : vector<2x32xf32>
    %133 = math.tanh %132 : vector<2x32xf32>
    %134 = arith.mulf %129, %133 : vector<2x32xf32>
    %135 = vector.extract_strided_slice %11 {offsets = [8, 0], sizes = [2, 32], strides = [1, 1]} : vector<16x32xf32> to vector<2x32xf32>
    %136 = arith.mulf %134, %135 : vector<2x32xf32>
    %cst_32 = arith.constant dense<0.000000e+00> : vector<2x128xf32>
    %137 = tpu.matmul %136, %12, %cst_32 {dimension_numbers = #tpu.dot_dimension_numbers<[1], [0], [0], [1], [0, 0, 1, 1], [], []>} : vector<2x32xf32>, vector<32x128xf32>, vector<2x128xf32> -> vector<2x128xf32>
    %138 = vector.extract_strided_slice %5 {offsets = [8, 0], sizes = [2, 128], strides = [1, 1]} : vector<16x128xf32> to vector<2x128xf32>
    %139 = arith.addf %137, %138 : vector<2x128xf32>
    %140 = vector.extract_strided_slice %139 {offsets = [0, 0], sizes = [2, 32], strides = [1, 1]} : vector<2x128xf32> to vector<2x32xf32>
    %141 = arith.negf %140 : vector<2x32xf32>
    %142 = math.exp %141 : vector<2x32xf32>
    %cst_33 = arith.constant 1.000000e+00 : f32
    %143 = vector.broadcast %cst_33 : f32 to vector<2x32xf32>
    %144 = arith.addf %143, %142 : vector<2x32xf32>
    %145 = arith.divf %143, %144 : vector<2x32xf32>
    %146 = vector.extract_strided_slice %139 {offsets = [0, 32], sizes = [2, 32], strides = [1, 1]} : vector<2x128xf32> to vector<2x32xf32>
    %147 = arith.negf %146 : vector<2x32xf32>
    %148 = math.exp %147 : vector<2x32xf32>
    %cst_34 = arith.constant 1.000000e+00 : f32
    %149 = vector.broadcast %cst_34 : f32 to vector<2x32xf32>
    %150 = arith.addf %149, %148 : vector<2x32xf32>
    %151 = arith.divf %149, %150 : vector<2x32xf32>
    %152 = vector.extract_strided_slice %139 {offsets = [0, 64], sizes = [2, 32], strides = [1, 1]} : vector<2x128xf32> to vector<2x32xf32>
    %153 = math.tanh %152 : vector<2x32xf32>
    %154 = vector.extract_strided_slice %139 {offsets = [0, 96], sizes = [2, 32], strides = [1, 1]} : vector<2x128xf32> to vector<2x32xf32>
    %155 = arith.negf %154 : vector<2x32xf32>
    %156 = math.exp %155 : vector<2x32xf32>
    %cst_35 = arith.constant 1.000000e+00 : f32
    %157 = vector.broadcast %cst_35 : f32 to vector<2x32xf32>
    %158 = arith.addf %157, %156 : vector<2x32xf32>
    %159 = arith.divf %157, %158 : vector<2x32xf32>
    %160 = arith.mulf %151, %153 : vector<2x32xf32>
    %161 = arith.mulf %145, %132 : vector<2x32xf32>
    %162 = arith.addf %160, %161 : vector<2x32xf32>
    %163 = math.tanh %162 : vector<2x32xf32>
    %164 = arith.mulf %159, %163 : vector<2x32xf32>
    %165 = vector.extract_strided_slice %11 {offsets = [10, 0], sizes = [2, 32], strides = [1, 1]} : vector<16x32xf32> to vector<2x32xf32>
    %166 = arith.mulf %164, %165 : vector<2x32xf32>
    %cst_36 = arith.constant dense<0.000000e+00> : vector<2x128xf32>
    %167 = tpu.matmul %166, %12, %cst_36 {dimension_numbers = #tpu.dot_dimension_numbers<[1], [0], [0], [1], [0, 0, 1, 1], [], []>} : vector<2x32xf32>, vector<32x128xf32>, vector<2x128xf32> -> vector<2x128xf32>
    %168 = vector.extract_strided_slice %5 {offsets = [10, 0], sizes = [2, 128], strides = [1, 1]} : vector<16x128xf32> to vector<2x128xf32>
    %169 = arith.addf %167, %168 : vector<2x128xf32>
    %170 = vector.extract_strided_slice %169 {offsets = [0, 0], sizes = [2, 32], strides = [1, 1]} : vector<2x128xf32> to vector<2x32xf32>
    %171 = arith.negf %170 : vector<2x32xf32>
    %172 = math.exp %171 : vector<2x32xf32>
    %cst_37 = arith.constant 1.000000e+00 : f32
    %173 = vector.broadcast %cst_37 : f32 to vector<2x32xf32>
    %174 = arith.addf %173, %172 : vector<2x32xf32>
    %175 = arith.divf %173, %174 : vector<2x32xf32>
    %176 = vector.extract_strided_slice %169 {offsets = [0, 32], sizes = [2, 32], strides = [1, 1]} : vector<2x128xf32> to vector<2x32xf32>
    %177 = arith.negf %176 : vector<2x32xf32>
    %178 = math.exp %177 : vector<2x32xf32>
    %cst_38 = arith.constant 1.000000e+00 : f32
    %179 = vector.broadcast %cst_38 : f32 to vector<2x32xf32>
    %180 = arith.addf %179, %178 : vector<2x32xf32>
    %181 = arith.divf %179, %180 : vector<2x32xf32>
    %182 = vector.extract_strided_slice %169 {offsets = [0, 64], sizes = [2, 32], strides = [1, 1]} : vector<2x128xf32> to vector<2x32xf32>
    %183 = math.tanh %182 : vector<2x32xf32>
    %184 = vector.extract_strided_slice %169 {offsets = [0, 96], sizes = [2, 32], strides = [1, 1]} : vector<2x128xf32> to vector<2x32xf32>
    %185 = arith.negf %184 : vector<2x32xf32>
    %186 = math.exp %185 : vector<2x32xf32>
    %cst_39 = arith.constant 1.000000e+00 : f32
    %187 = vector.broadcast %cst_39 : f32 to vector<2x32xf32>
    %188 = arith.addf %187, %186 : vector<2x32xf32>
    %189 = arith.divf %187, %188 : vector<2x32xf32>
    %190 = arith.mulf %181, %183 : vector<2x32xf32>
    %191 = arith.mulf %175, %162 : vector<2x32xf32>
    %192 = arith.addf %190, %191 : vector<2x32xf32>
    %193 = math.tanh %192 : vector<2x32xf32>
    %194 = arith.mulf %189, %193 : vector<2x32xf32>
    %195 = vector.extract_strided_slice %11 {offsets = [12, 0], sizes = [2, 32], strides = [1, 1]} : vector<16x32xf32> to vector<2x32xf32>
    %196 = arith.mulf %194, %195 : vector<2x32xf32>
    %cst_40 = arith.constant dense<0.000000e+00> : vector<2x128xf32>
    %197 = tpu.matmul %196, %12, %cst_40 {dimension_numbers = #tpu.dot_dimension_numbers<[1], [0], [0], [1], [0, 0, 1, 1], [], []>} : vector<2x32xf32>, vector<32x128xf32>, vector<2x128xf32> -> vector<2x128xf32>
    %198 = vector.extract_strided_slice %5 {offsets = [12, 0], sizes = [2, 128], strides = [1, 1]} : vector<16x128xf32> to vector<2x128xf32>
    %199 = arith.addf %197, %198 : vector<2x128xf32>
    %200 = vector.extract_strided_slice %199 {offsets = [0, 0], sizes = [2, 32], strides = [1, 1]} : vector<2x128xf32> to vector<2x32xf32>
    %201 = arith.negf %200 : vector<2x32xf32>
    %202 = math.exp %201 : vector<2x32xf32>
    %cst_41 = arith.constant 1.000000e+00 : f32
    %203 = vector.broadcast %cst_41 : f32 to vector<2x32xf32>
    %204 = arith.addf %203, %202 : vector<2x32xf32>
    %205 = arith.divf %203, %204 : vector<2x32xf32>
    %206 = vector.extract_strided_slice %199 {offsets = [0, 32], sizes = [2, 32], strides = [1, 1]} : vector<2x128xf32> to vector<2x32xf32>
    %207 = arith.negf %206 : vector<2x32xf32>
    %208 = math.exp %207 : vector<2x32xf32>
    %cst_42 = arith.constant 1.000000e+00 : f32
    %209 = vector.broadcast %cst_42 : f32 to vector<2x32xf32>
    %210 = arith.addf %209, %208 : vector<2x32xf32>
    %211 = arith.divf %209, %210 : vector<2x32xf32>
    %212 = vector.extract_strided_slice %199 {offsets = [0, 64], sizes = [2, 32], strides = [1, 1]} : vector<2x128xf32> to vector<2x32xf32>
    %213 = math.tanh %212 : vector<2x32xf32>
    %214 = vector.extract_strided_slice %199 {offsets = [0, 96], sizes = [2, 32], strides = [1, 1]} : vector<2x128xf32> to vector<2x32xf32>
    %215 = arith.negf %214 : vector<2x32xf32>
    %216 = math.exp %215 : vector<2x32xf32>
    %cst_43 = arith.constant 1.000000e+00 : f32
    %217 = vector.broadcast %cst_43 : f32 to vector<2x32xf32>
    %218 = arith.addf %217, %216 : vector<2x32xf32>
    %219 = arith.divf %217, %218 : vector<2x32xf32>
    %220 = arith.mulf %211, %213 : vector<2x32xf32>
    %221 = arith.mulf %205, %192 : vector<2x32xf32>
    %222 = arith.addf %220, %221 : vector<2x32xf32>
    %223 = math.tanh %222 : vector<2x32xf32>
    %224 = arith.mulf %219, %223 : vector<2x32xf32>
    %225 = vector.extract_strided_slice %11 {offsets = [14, 0], sizes = [2, 32], strides = [1, 1]} : vector<16x32xf32> to vector<2x32xf32>
    %226 = arith.mulf %224, %225 : vector<2x32xf32>
    %cst_44 = arith.constant dense<0.000000e+00> : vector<2x128xf32>
    %227 = tpu.matmul %226, %12, %cst_44 {dimension_numbers = #tpu.dot_dimension_numbers<[1], [0], [0], [1], [0, 0, 1, 1], [], []>} : vector<2x32xf32>, vector<32x128xf32>, vector<2x128xf32> -> vector<2x128xf32>
    %228 = vector.extract_strided_slice %5 {offsets = [14, 0], sizes = [2, 128], strides = [1, 1]} : vector<16x128xf32> to vector<2x128xf32>
    %229 = arith.addf %227, %228 : vector<2x128xf32>
    %230 = vector.extract_strided_slice %229 {offsets = [0, 0], sizes = [2, 32], strides = [1, 1]} : vector<2x128xf32> to vector<2x32xf32>
    %231 = arith.negf %230 : vector<2x32xf32>
    %232 = math.exp %231 : vector<2x32xf32>
    %cst_45 = arith.constant 1.000000e+00 : f32
    %233 = vector.broadcast %cst_45 : f32 to vector<2x32xf32>
    %234 = arith.addf %233, %232 : vector<2x32xf32>
    %235 = arith.divf %233, %234 : vector<2x32xf32>
    %236 = vector.extract_strided_slice %229 {offsets = [0, 32], sizes = [2, 32], strides = [1, 1]} : vector<2x128xf32> to vector<2x32xf32>
    %237 = arith.negf %236 : vector<2x32xf32>
    %238 = math.exp %237 : vector<2x32xf32>
    %cst_46 = arith.constant 1.000000e+00 : f32
    %239 = vector.broadcast %cst_46 : f32 to vector<2x32xf32>
    %240 = arith.addf %239, %238 : vector<2x32xf32>
    %241 = arith.divf %239, %240 : vector<2x32xf32>
    %242 = vector.extract_strided_slice %229 {offsets = [0, 64], sizes = [2, 32], strides = [1, 1]} : vector<2x128xf32> to vector<2x32xf32>
    %243 = math.tanh %242 : vector<2x32xf32>
    %244 = vector.extract_strided_slice %229 {offsets = [0, 96], sizes = [2, 32], strides = [1, 1]} : vector<2x128xf32> to vector<2x32xf32>
    %245 = arith.negf %244 : vector<2x32xf32>
    %246 = math.exp %245 : vector<2x32xf32>
    %cst_47 = arith.constant 1.000000e+00 : f32
    %247 = vector.broadcast %cst_47 : f32 to vector<2x32xf32>
    %248 = arith.addf %247, %246 : vector<2x32xf32>
    %249 = arith.divf %247, %248 : vector<2x32xf32>
    %250 = arith.mulf %241, %243 : vector<2x32xf32>
    %251 = arith.mulf %235, %222 : vector<2x32xf32>
    %252 = arith.addf %250, %251 : vector<2x32xf32>
    %253 = math.tanh %252 : vector<2x32xf32>
    %254 = arith.mulf %249, %253 : vector<2x32xf32>
    %c0_48 = arith.constant 0 : index
    %c0_49 = arith.constant 0 : index
    %255 = vector.load %arg8[%c0_48, %c0_49] : memref<32x64xf32, #tpu.memory_space<vmem>>, vector<32x64xf32>
    %cst_50 = arith.constant dense<0.000000e+00> : vector<2x64xf32>
    %256 = tpu.matmul %254, %255, %cst_50 {dimension_numbers = #tpu.dot_dimension_numbers<[1], [0], [0], [1], [0, 0, 1, 1], [], []>} : vector<2x32xf32>, vector<32x64xf32>, vector<2x64xf32> -> vector<2x64xf32>
    %c0_51 = arith.constant 0 : index
    %c0_52 = arith.constant 0 : index
    %257 = vector.load %arg9[%c0_51, %c0_52] : memref<1x64xf32, #tpu.memory_space<vmem>>, vector<1x64xf32>
    %258 = vector.broadcast %257 : vector<1x64xf32> to vector<2x64xf32>
    %259 = arith.addf %256, %258 : vector<2x64xf32>
    %260 = vector.extract_strided_slice %259 {offsets = [0, 0], sizes = [2, 32], strides = [1, 1]} : vector<2x64xf32> to vector<2x32xf32>
    %261 = math.tanh %260 : vector<2x32xf32>
    %262 = vector.extract_strided_slice %259 {offsets = [0, 32], sizes = [2, 32], strides = [1, 1]} : vector<2x64xf32> to vector<2x32xf32>
    %cst_53 = arith.constant 0.000000e+00 : f32
    %263 = vector.broadcast %cst_53 : f32 to vector<2x32xf32>
    %264 = arith.maximumf %262, %263 : vector<2x32xf32>
    %c0_54 = arith.constant 0 : index
    %c0_55 = arith.constant 0 : index
    %265 = vector.load %arg10[%c0_54, %c0_55] : memref<32x32xf32, #tpu.memory_space<vmem>>, vector<32x32xf32>
    %cst_56 = arith.constant dense<0.000000e+00> : vector<2x32xf32>
    %266 = tpu.matmul %264, %265, %cst_56 {dimension_numbers = #tpu.dot_dimension_numbers<[1], [0], [0], [1], [0, 0, 1, 1], [], []>} : vector<2x32xf32>, vector<32x32xf32>, vector<2x32xf32> -> vector<2x32xf32>
    %c0_57 = arith.constant 0 : index
    %c0_58 = arith.constant 0 : index
    %267 = vector.load %arg11[%c0_57, %c0_58] : memref<1x32xf32, #tpu.memory_space<vmem>>, vector<1x32xf32>
    %268 = vector.broadcast %267 : vector<1x32xf32> to vector<2x32xf32>
    %269 = arith.addf %266, %268 : vector<2x32xf32>
    %270 = arith.addf %261, %269 : vector<2x32xf32>
    %c0_59 = arith.constant 0 : index
    %c0_60 = arith.constant 0 : index
    %271 = vector.load %arg12[%c0_59, %c0_60] : memref<32x32xf32, #tpu.memory_space<vmem>>, vector<32x32xf32>
    %cst_61 = arith.constant dense<0.000000e+00> : vector<2x32xf32>
    %272 = tpu.matmul %270, %271, %cst_61 {dimension_numbers = #tpu.dot_dimension_numbers<[1], [0], [0], [1], [0, 0, 1, 1], [], []>} : vector<2x32xf32>, vector<32x32xf32>, vector<2x32xf32> -> vector<2x32xf32>
    %c0_62 = arith.constant 0 : index
    %c0_63 = arith.constant 0 : index
    %273 = vector.load %arg13[%c0_62, %c0_63] : memref<1x32xf32, #tpu.memory_space<vmem>>, vector<1x32xf32>
    %274 = vector.broadcast %273 : vector<1x32xf32> to vector<2x32xf32>
    %275 = arith.addf %272, %274 : vector<2x32xf32>
    %cst_64 = arith.constant 0.000000e+00 : f32
    %276 = vector.broadcast %cst_64 : f32 to vector<2x32xf32>
    %277 = arith.maximumf %275, %276 : vector<2x32xf32>
    %c0_65 = arith.constant 0 : index
    %c0_66 = arith.constant 0 : index
    %278 = vector.load %arg14[%c0_65, %c0_66] : memref<2x32xf32, #tpu.memory_space<vmem>>, vector<2x32xf32>
    tpu.vector_store %arg14[%c0_65, %c0_66], %277 {strides = array<i32>} : memref<2x32xf32, #tpu.memory_space<vmem>>, vector<2x32xf32>,
    return
  }
  func.func @transform_0(%arg0: i32) -> (i32, i32) {
    %c0_i32 = arith.constant 0 : i32
    %c0_i32_0 = arith.constant 0 : i32
    %c0_i32_1 = arith.constant 0 : i32
    return %c0_i32, %c0_i32_0 : i32, i32
  }
  func.func @transform_1(%arg0: i32) -> (i32, i32) {
    %c0_i32 = arith.constant 0 : i32
    %c0_i32_0 = arith.constant 0 : i32
    %c0_i32_1 = arith.constant 0 : i32
    return %c0_i32, %c0_i32_0 : i32, i32
  }
  func.func @transform_2(%arg0: i32) -> (i32, i32) {
    %c0_i32 = arith.constant 0 : i32
    %c0_i32_0 = arith.constant 0 : i32
    %c0_i32_1 = arith.constant 0 : i32
    return %c0_i32, %c0_i32_0 : i32, i32
  }
  func.func @transform_3(%arg0: i32) -> (i32, i32) {
    %c0_i32 = arith.constant 0 : i32
    %c0_i32_0 = arith.constant 0 : i32
    %c0_i32_1 = arith.constant 0 : i32
    return %c0_i32, %c0_i32_0 : i32, i32
  }
  func.func @transform_4(%arg0: i32) -> (i32, i32) {
    %c0_i32 = arith.constant 0 : i32
    %c0_i32_0 = arith.constant 0 : i32
    %c0_i32_1 = arith.constant 0 : i32
    return %c0_i32, %c0_i32_0 : i32, i32
  }
  func.func @transform_5(%arg0: i32) -> (i32, i32) {
    %c0_i32 = arith.constant 0 : i32
    %c0_i32_0 = arith.constant 0 : i32
    %c0_i32_1 = arith.constant 0 : i32
    return %c0_i32, %c0_i32_0 : i32, i32
  }
  func.func @transform_6(%arg0: i32) -> (i32, i32) {
    %c0_i32 = arith.constant 0 : i32
    %c0_i32_0 = arith.constant 0 : i32
    %c0_i32_1 = arith.constant 0 : i32
    return %c0_i32, %c0_i32_0 : i32, i32
  }
  func.func @transform_7(%arg0: i32) -> (i32, i32) {
    %c0_i32 = arith.constant 0 : i32
    %c0_i32_0 = arith.constant 0 : i32
    %c0_i32_1 = arith.constant 0 : i32
    return %c0_i32, %c0_i32_0 : i32, i32
  }
  func.func @transform_8(%arg0: i32) -> (i32, i32) {
    %c0_i32 = arith.constant 0 : i32
    %c0_i32_0 = arith.constant 0 : i32
    %c0_i32_1 = arith.constant 0 : i32
    return %c0_i32, %c0_i32_0 : i32, i32
  }
  func.func @transform_9(%arg0: i32) -> (i32, i32) {
    %c0_i32 = arith.constant 0 : i32
    %c0_i32_0 = arith.constant 0 : i32
    %c0_i32_1 = arith.constant 0 : i32
    return %c0_i32, %c0_i32_0 : i32, i32
  }
  func.func @transform_10(%arg0: i32) -> (i32, i32) {
    %c0_i32 = arith.constant 0 : i32
    %c0_i32_0 = arith.constant 0 : i32
    %c0_i32_1 = arith.constant 0 : i32
    return %c0_i32, %c0_i32_0 : i32, i32
  }
  func.func @transform_11(%arg0: i32) -> (i32, i32) {
    %c0_i32 = arith.constant 0 : i32
    %c0_i32_0 = arith.constant 0 : i32
    %c0_i32_1 = arith.constant 0 : i32
    return %c0_i32, %c0_i32_0 : i32, i32
  }
  func.func @transform_12(%arg0: i32) -> (i32, i32) {
    %c0_i32 = arith.constant 0 : i32
    %c0_i32_0 = arith.constant 0 : i32
    %c0_i32_1 = arith.constant 0 : i32
    return %c0_i32, %c0_i32_0 : i32, i32
  }
  func.func @transform_13(%arg0: i32) -> (i32, i32) {
    %c0_i32 = arith.constant 0 : i32
    %c0_i32_0 = arith.constant 0 : i32
    %c0_i32_1 = arith.constant 0 : i32
    return %c0_i32, %c0_i32_0 : i32, i32
  }
}

</mosaic_0001>

<bundles_post_ra>
// kernel: mul.4
= control target key start
LH: loop header
LB: loop body
LE: loop exit
PB: predicated region body
PF: predicated region fallthrough
CT: control target
= control target key end

     0   :  { %s56_s0 = inlined_call_operand.vmem [shape: f32[14,32], index: 0, kind: input, shape index: {}]   ;;  %s57_s1 = inlined_call_operand.vmem [shape: f32[14,32], index: 1, kind: input, shape index: {}]   ;;  %s58_s2 = inlined_call_operand.vmem [shape: f32[14,32], index: 2, kind: output, shape index: {}]  }
   0x1   :  { %v3_v0 = vld [vmem:[%s56_s0] sm:$0xff]  ;;  %v20_v2 = vld [vmem:[%s56_s0 + $0x8] sm:$0xff] }
   0x2   :  { %v4_v1 = vld [vmem:[%s57_s1] sm:$0xff]  ;;  %v21_v4 = vld [vmem:[%s57_s1 + $0x8] sm:$0xff] }
   0x3   :  { %v7_v3 = vmul.f32 %v4_v1, %v3_v0  ;;  %v16_v5 = vmul.f32 %v21_v4, %v20_v2 }
   0x5   :  { %9 = vst [vmem:[%s58_s2] sm:$0xff] %v7_v3  ;;  %22 = vst [vmem:[%s58_s2 + $0x8] sm:$0xff] %v16_v5 }

// kernel: structure_encoder_forward.1
= control target key start
LH: loop header
LB: loop body
LE: loop exit
PB: predicated region body
PF: predicated region fallthrough
CT: control target
= control target key end

     0   :  { %vm58_vm0 = vcmask 261120   ;;  %s2138_s0 = inlined_call_operand.vmem [shape: f32[16,32], index: 0, kind: input, shape index: {}]   ;;  %s2139_s1 = inlined_call_operand.vmem [shape: f32[16,32], index: 1, kind: input, shape index: {}]   ;;  %s2140_s2 = inlined_call_operand.vmem [shape: f32[32,32], index: 2, kind: input, shape index: {}]   ;;  %s2141_s3 = inlined_call_operand.vmem [shape: f32[1,32], index: 3, kind: input, shape index: {}]   ;;  %s2142_s4 = inlined_call_operand.vmem [shape: f32[32,128], index: 4, kind: input, shape index: {}]   ;;  %s2143_s5 = inlined_call_operand.vmem [shape: f32[32,128], index: 5, kind: input, shape index: {}]   ;;  %s2144_s6 = inlined_call_operand.vmem [shape: f32[1,128], index: 6, kind: input, shape index: {}]   ;;  %s2145_s7 = inlined_call_operand.vmem [shape: f32[32,64], index: 7, kind: input, shape index: {}]   ;;  %s2146_s8 = inlined_call_operand.vmem [shape: f32[1,64], index: 8, kind: input, shape index: {}]   ;;  %s2147_s9 = inlined_call_operand.vmem [shape: f32[32,32], index: 9, kind: input, shape index: {}]   ;;  %s2148_s10 = inlined_call_operand.vmem [shape: f32[1,32], index: 10, kind: input, shape index: {}]   ;;  %s2149_s11 = inlined_call_operand.vmem [shape: f32[32,32], index: 11, kind: input, shape index: {}]   ;;  %s2150_s12 = inlined_call_operand.vmem [shape: f32[1,32], index: 12, kind: input, shape index: {}]   ;;  %s2151_s13 = inlined_call_operand.hbm [shape: f32[2,32], index: 13, kind: output, shape index: {}]  }
   0x1   :  { %v142_v0 = vld [vmem:[%s2140_s2] sm:$0xff]  ;;  %v143_v1 = vld [vmem:[%s2140_s2 + $0x8] sm:$0xff]  ;;  %v144_v2 = vld [vmem:[%s2140_s2 + $0x10] sm:$0xff] }
   0x2   :  { %v1629_v3 = vpack.c.bf16 %v143_v1, %v142_v0  ;;  %v145_v4 = vld [vmem:[%s2140_s2 + $0x18] sm:$0xff]  ;;  %v140_v5 = vld [vmem:[%s2139_s1] sm:$0xff]  ;;  %v48_v8 = vld [vmem:[%s2143_s5 + $0x8] sm:$0xff] }
   0x3   :  { %v1633_v6 = vpack.c.bf16 %v145_v4, %v144_v2  ;;  %1497 = vmatprep.mubr.msk.f32.mxu1 %vm58_vm0, %v140_v5  ;;  %v47_v7 = vld [vmem:[%s2143_s5] sm:$0xff]  ;;  %v49_v9 = vld [vmem:[%s2143_s5 + $0x10] sm:$0xff]  ;;  %v50_v11 = vld [vmem:[%s2143_s5 + $0x18] sm:$0xff] }
   0x4   :  { %1630 = vmatprep.subr.bf16.mxu1 %v1629_v3  ;;  %v1621_v10 = vpack.c.bf16 %v48_v8, %v47_v7  ;;  %v45_v12 = vld [vmem:[%s2138_s0] sm:$0xff]  ;;  %v1625_v13 = vpack.c.bf16 %v50_v11, %v49_v9 }
   0x5   :  { %1632 = vmatpush3.bf16.msra.mxu1 %v1629_v3  ;;  %1486 = vmatprep.mubr.msk.f32.mxu0 %vm58_vm0, %v45_v12 }
   0x6   :  { %18 = vsyncpa [#allocation3], 0  ;;  %1634 = vmatprep.subr.bf16.mxu1 %v1633_v6  ;;  %1622 = vmatprep.subr.bf16.mxu0 %v1621_v10  ;;  %v234_v14 = vld [vmem:[%s2142_s4] sm:$0xff]  ;;  %v235_v15 = vld [vmem:[%s2142_s4 + $0x8] sm:$0xff]  ;;  %v1800_v17 = vmov 0.0|0.0   ;;  %vm1801_vm1 = vmmov 0  }
   0x7   :  { %1624 = vmatpush3.bf16.msra.mxu0 %v1621_v10  ;;  %v141_v16 = vld [vmem:[%s2139_s1 + $0x8] sm:$0xff]  ;;  %v1922_v19 = vpack.c.bf16 %v235_v15, %v234_v14  ;;  %v236_v20 = vld [vmem:[%s2142_s4 + $0x10] sm:$0xff]  ;;  %v237_v21 = vld [vmem:[%s2142_s4 + $0x18] sm:$0xff]  ;;  %v1802_v23 = vmov 0.0   ;;  %s1805_s22 = smov 64   ;;  %vm1367_vm2 = vcmask 254976  }
   0x8   :  { %1626 = vmatprep.subr.bf16.mxu0 %v1625_v13  ;;  %v46_v18 = vld [vmem:[%s2138_s0 + $0x8] sm:$0xff]  ;;  %v1937_v22 = vpack.c.bf16 %v237_v21, %v236_v20  ;;  %v1386_v24 = vld [vmem:[%s2141_s3] ss:$0 sm:$0xff]  ;;  %s1803_s3 = smov 96  }
   0x9   :  { %1636 = vmatpush3.bf16.msra.mxu1 %v1633_v6  ;;  %v1383_v26 = vld [vmem:[%s2144_s6] ss:$0 sm:$0xff]  ;;  %s1804_s6 = smov 32  }
   0xa   :  { %1643 = vmatprep.subr.bf16.mxu1 %v1800_v17 }
   0xb   :  { %1628 = vmatpush3.bf16.msra.mxu0 %v1625_v13 }
   0xc   :  { %1498 = vmatmul.mubr.msk.f32.vlgmr.msra.gmra.mrb[0].mxu1 %vm58_vm0, %v141_v16  ;;  %1637 = vmatprep.subr.bf16.mxu0 %v1800_v17 }
   0xd   :  { %1645 = vmatpush3.bf16.msra.mxu1 %v1922_v19  ;;  %1519 = vmatprep.mubr.msk.f32.mxu1 %vm1801_vm1, %v1802_v23 }
   0xe   :  { %1487 = vmatmul.mubr.msk.f32.vlgmr.msra.gmra.mrb[0].mxu0 %vm58_vm0, %v46_v18  ;;  %1646 = vmatprep.subr.bf16.mxu1 %v1800_v17 }
   0xf   :  { %1639 = vmatpush3.bf16.msra.mxu0 %v1922_v19  ;;  %1508 = vmatprep.mubr.msk.f32.mxu0 %vm1801_vm1, %v1802_v23 }
  0x10   :  { %1640 = vmatprep.subr.bf16.mxu0 %v1800_v17 }
  0x11   :  { %1648 = vmatpush3.bf16.msra.mxu1 %v1937_v22 }
  0x12   :  { %1655 = vmatprep.subr.bf16.mxu1 %v1800_v17 }
  0x13   :  { %1642 = vmatpush3.bf16.msra.mxu0 %v1937_v22 }
  0x14   :  { %1649 = vmatprep.subr.bf16.mxu0 %v1800_v17 }
  0xdf   :  { %v1499_v25 = vpop.f32.mrb[0].mxu1 }
  0xe0   :  { %v1953_v27 = vadd.f32 %v1499_v25, %v1386_v24  ;;  %v225_v28 = vpop.f32.mrb[1].mxu1 }
  0xe1   :  { %v1955_v29 = vadd.f32 %v1386_v24, %v225_v28  ;;  %v1488_v30 = vpop.f32.mrb[0].mxu0 }
  0xe2   :  { %v1957_v31 = vadd.f32 %v1488_v30, %v1383_v26  ;;  %v131_v32 = vpop.f32.mrb[1].mxu0 }
  0xe3   :  { %v238_v33 = vmul.f32 0.0, %v1955_v29  ;;  %v1967_v34 = vadd.f32 %v1383_v26, %v131_v32  ;;  %v337_v49 = vrot.slane %v1955_v29, 2  ;;  %v448_v2 = vrot.slane %v1955_v29, 4 }
  0xe4   :  { %v558_v30 = vrot.slane %v1955_v29, 6 }
  0xe5   :  { %1509 = vmatmul.mubr.msk.f32.vlgmr.msra.gmra.mrb[2].mxu0 %vm58_vm0, %v238_v33  ;;  %v346_v55 = vrot.slane %v1967_v34, 2  ;;  %v456_v13 = vrot.slane %v1967_v34, 4  ;;  %v566_v29 = vrot.slane %v1967_v34, 6 }
  0xe6   :  { %1651 = vmatpush3.bf16.msra.mxu0 %v1922_v19  ;;  %1530 = vmatprep.mubr.msk.f32.mxu0 %vm1801_vm1, %v1802_v23 }
  0xe7   :  { %1652 = vmatprep.subr.bf16.mxu0 %v1800_v17 }
  0xea   :  { %1654 = vmatpush3.bf16.msra.mxu0 %v1937_v22 }
  0xeb   :  { %1661 = vmatprep.subr.bf16.mxu0 %v1800_v17 }
 0x1b8   :  { %v308_v35 = vpop.f32.mrb[2].mxu0 }
 0x1b9   :  { %v309_v36 = vadd.f32 %v308_v35, %v1967_v34  ;;  %v1510_v37 = vpop.f32.mrb[3].mxu0 }
 0x1bb   :  { %v1390_v38 = vmul.f32 -1.442695, %v309_v36  ;;  %1710 = vtanh.f32 %v309_v36 }
 0x1bd   :  { %1712 = vpow2.f32 %v1390_v38 }
 0x1c5   :  { %v1711_v39 = vpop.eup %1710 }
 0x1c6   :  { %320 = vrot.lane.b32.xlu0 %v1711_v39, %s1803_s3 }
 0x1c7   :  { %v1713_v40 = vpop.eup %1712 }
 0x1c8   :  { %v315_v41 = vadd.f32 1.0, %v1713_v40 }
 0x1ca   :  { %1714 = vrcp.f32 %v315_v41 }
 0x1d4   :  { %v1715_v42 = vpop.eup %1714 }
 0x1d5   :  { %v324_v43 = vmul.f32 0.0, %v1715_v42 }
 0x1d7   :  { %326 = vrot.lane.b32.xlu0 %v324_v43, %s1804_s6 }
 0x238   :  { %v321_v44 = vpop.permute.xlu0 %320 }
 0x239   :  { %v323_v45 = vmul.f32 %v1715_v42, %v321_v44 }
 0x249   :  { %v327_v46 = vpop.permute.xlu0 %326 }
 0x24a   :  { %v329_v47 = vadd.f32 %v327_v46, %v323_v45 }
 0x24c   :  { %1716 = vtanh.f32 %v329_v47 }
 0x256   :  { %v1717_v48 = vpop.eup %1716 }
 0x257   :  { %332 = vrot.lane.b32.xlu1 %v1717_v48, %s1805_s22 }
 0x25b   :  { %338 = vrot.lane.b32.xlu1 %v337_v49, %s1803_s3 }
 0x25f   :  { %433 = vrot.lane.b32.xlu1 %v329_v47, %s1803_s3 }
 0x2c9   :  { %v333_v50 = vpop.permute.xlu1 %332 }
 0x2ca   :  { %v335_v51 = vmul.f32 %v1715_v42, %v333_v50 }
 0x2cd   :  { %v339_v52 = vpop.permute.xlu1 %338 }
 0x2ce   :  { %v341_v53 = vmul.f32 %v339_v52, %v335_v51 }
 0x2d0   :  { %343 = vrot.lane.b32.xlu0 %v341_v53, %s1804_s6 }
 0x2d1   :  { %v434_v0 = vpop.permute.xlu1 %433 }
 0x342   :  { %v344_v54 = vpop.permute.xlu0 %343 }
 0x343   :  { %1520 = vmatmul.mubr.msk.f32.vlgmr.msra.gmra.mrb[2].mxu1 %vm58_vm0, %v344_v54 }
 0x344   :  { %1657 = vmatpush3.bf16.msra.mxu1 %v1922_v19  ;;  %1541 = vmatprep.mubr.msk.f32.mxu1 %vm1801_vm1, %v1802_v23 }
 0x345   :  { %1658 = vmatprep.subr.bf16.mxu1 %v1800_v17 }
 0x348   :  { %1660 = vmatpush3.bf16.msra.mxu1 %v1937_v22 }
 0x349   :  { %1667 = vmatprep.subr.bf16.mxu1 %v1800_v17 }
 0x416   :  { %v416_v56 = vpop.f32.mrb[2].mxu1 }
 0x417   :  { %v417_v57 = vadd.f32 %v416_v56, %v346_v55  ;;  %v1521_v58 = vpop.f32.mrb[3].mxu1 }
 0x419   :  { %v1392_v59 = vmul.f32 -1.442695, %v417_v57  ;;  %1718 = vtanh.f32 %v417_v57 }
 0x41b   :  { %1720 = vpow2.f32 %v1392_v59 }
 0x423   :  { %v1719_v60 = vpop.eup %1718 }
 0x424   :  { %428 = vrot.lane.b32.xlu0 %v1719_v60, %s1803_s3 }
 0x425   :  { %v1721_v61 = vpop.eup %1720 }
 0x426   :  { %v423_v62 = vadd.f32 1.0, %v1721_v61 }
 0x428   :  { %1722 = vrcp.f32 %v423_v62 }
 0x432   :  { %v1723_v63 = vpop.eup %1722 }
 0x433   :  { %v436_v1 = vmul.f32 %v1723_v63, %v434_v0 }
 0x435   :  { %438 = vrot.lane.b32.xlu1 %v436_v1, %s1804_s6 }
 0x439   :  { %449 = vrot.lane.b32.xlu1 %v448_v2, %s1803_s3 }
 0x496   :  { %v429_v3 = vpop.permute.xlu0 %428 }
 0x497   :  { %v431_v4 = vmul.f32 %v1723_v63, %v429_v3 }
 0x4a7   :  { %v439_v5 = vpop.permute.xlu1 %438 }
 0x4a8   :  { %v441_v6 = vadd.f32 %v439_v5, %v431_v4 }
 0x4aa   :  { %1724 = vtanh.f32 %v441_v6  ;;  %543 = vrot.lane.b32.xlu1 %v441_v6, %s1803_s3 }
 0x4ab   :  { %v450_v10 = vpop.permute.xlu1 %449 }
 0x4b4   :  { %v1725_v7 = vpop.eup %1724 }
 0x4b5   :  { %444 = vrot.lane.b32.xlu0 %v1725_v7, %s1805_s22 }
 0x51c   :  { %v544_v26 = vpop.permute.xlu1 %543 }
 0x527   :  { %v445_v8 = vpop.permute.xlu0 %444 }
 0x528   :  { %v447_v9 = vmul.f32 %v1723_v63, %v445_v8  ;;  %v776_v8 = vrot.slane %v1953_v27, 2 }
 0x52a   :  { %v452_v11 = vmul.f32 %v450_v10, %v447_v9 }
 0x52c   :  { %454 = vrot.lane.b32.xlu0 %v452_v11, %s1804_s6 }
 0x59e   :  { %v455_v12 = vpop.permute.xlu0 %454 }
 0x59f   :  { %1531 = vmatmul.mubr.msk.f32.vlgmr.msra.gmra.mrb[4].mxu0 %vm58_vm0, %v455_v12 }
 0x5a0   :  { %1663 = vmatpush3.bf16.msra.mxu0 %v1922_v19  ;;  %1552 = vmatprep.mubr.msk.f32.mxu0 %vm1801_vm1, %v1802_v23 }
 0x5a1   :  { %1664 = vmatprep.subr.bf16.mxu0 %v1800_v17 }
 0x5a4   :  { %1666 = vmatpush3.bf16.msra.mxu0 %v1937_v22 }
 0x5a5   :  { %1673 = vmatprep.subr.bf16.mxu0 %v1800_v17 }
 0x672   :  { %v526_v14 = vpop.f32.mrb[4].mxu0 }
 0x673   :  { %v527_v15 = vadd.f32 %v526_v14, %v456_v13  ;;  %v1532_v16 = vpop.f32.mrb[5].mxu0 }
 0x675   :  { %v1394_v18 = vmul.f32 -1.442695, %v527_v15  ;;  %1726 = vtanh.f32 %v527_v15 }
 0x677   :  { %1728 = vpow2.f32 %v1394_v18 }
 0x67f   :  { %v1727_v20 = vpop.eup %1726 }
 0x680   :  { %538 = vrot.lane.b32.xlu0 %v1727_v20, %s1803_s3 }
 0x681   :  { %v1729_v21 = vpop.eup %1728 }
 0x682   :  { %v533_v24 = vadd.f32 1.0, %v1729_v21  ;;  %v785_v21 = vrot.slane %v1957_v31, 2 }
 0x684   :  { %1730 = vrcp.f32 %v533_v24 }
 0x68e   :  { %v1731_v25 = vpop.eup %1730 }
 0x68f   :  { %v546_v28 = vmul.f32 %v1731_v25, %v544_v26 }
 0x691   :  { %548 = vrot.lane.b32.xlu1 %v546_v28, %s1804_s6 }
 0x695   :  { %559 = vrot.lane.b32.xlu1 %v558_v30, %s1803_s3 }
 0x6f2   :  { %v539_v32 = vpop.permute.xlu0 %538 }
 0x6f3   :  { %v541_v33 = vmul.f32 %v1731_v25, %v539_v32 }
 0x703   :  { %v549_v35 = vpop.permute.xlu1 %548 }
 0x704   :  { %v551_v36 = vadd.f32 %v549_v35, %v541_v33 }
 0x706   :  { %1732 = vtanh.f32 %v551_v36  ;;  %653 = vrot.lane.b32.xlu1 %v551_v36, %s1803_s3 }
 0x707   :  { %v560_v40 = vpop.permute.xlu1 %559 }
 0x710   :  { %v1733_v37 = vpop.eup %1732 }
 0x711   :  { %554 = vrot.lane.b32.xlu0 %v1733_v37, %s1805_s22 }
 0x778   :  { %v654_v51 = vpop.permute.xlu1 %653 }
 0x783   :  { %v555_v38 = vpop.permute.xlu0 %554 }
 0x784   :  { %v557_v39 = vmul.f32 %v1731_v25, %v555_v38 }
 0x786   :  { %v562_v41 = vmul.f32 %v560_v40, %v557_v39 }
 0x788   :  { %564 = vrot.lane.b32.xlu0 %v562_v41, %s1804_s6 }
 0x7fa   :  { %v565_v42 = vpop.permute.xlu0 %564 }
 0x7fb   :  { %1542 = vmatmul.mubr.msk.f32.vlgmr.msra.gmra.mrb[4].mxu1 %vm58_vm0, %v565_v42 }
 0x7fc   :  { %1669 = vmatpush3.bf16.msra.mxu1 %v1922_v19  ;;  %1563 = vmatprep.mubr.msk.f32.mxu1 %vm1801_vm1, %v1802_v23 }
 0x7fd   :  { %1670 = vmatprep.subr.bf16.mxu1 %v1800_v17 }
 0x800   :  { %1672 = vmatpush3.bf16.msra.mxu1 %v1937_v22 }
 0x801   :  { %1679 = vmatprep.subr.bf16.mxu1 %v1800_v17 }
 0x8ce   :  { %v636_v43 = vpop.f32.mrb[4].mxu1 }
 0x8cf   :  { %v637_v44 = vadd.f32 %v636_v43, %v566_v29  ;;  %v1543_v45 = vpop.f32.mrb[5].mxu1 }
 0x8d1   :  { %v1396_v46 = vmul.f32 -1.442695, %v637_v44  ;;  %1734 = vtanh.f32 %v637_v44 }
 0x8d3   :  { %1736 = vpow2.f32 %v1396_v46  ;;  %v895_v46 = vrot.slane %v1957_v31, 4 }
 0x8db   :  { %v1735_v47 = vpop.eup %1734 }
 0x8dc   :  { %648 = vrot.lane.b32.xlu0 %v1735_v47, %s1803_s3 }
 0x8dd   :  { %v1737_v48 = vpop.eup %1736 }
 0x8de   :  { %v643_v49 = vadd.f32 1.0, %v1737_v48 }
 0x8e0   :  { %1738 = vrcp.f32 %v643_v49 }
 0x8ea   :  { %v1739_v50 = vpop.eup %1738 }
 0x8eb   :  { %v656_v52 = vmul.f32 %v1739_v50, %v654_v51 }
 0x8ed   :  { %658 = vrot.lane.b32.xlu1 %v656_v52, %s1804_s6 }
 0x8f1   :  { %669 = vrot.lane.b32.xlu1 %v1953_v27, %s1803_s3 }
 0x94e   :  { %v649_v34 = vpop.permute.xlu0 %648 }
 0x94f   :  { %v651_v53 = vmul.f32 %v1739_v50, %v649_v34 }
 0x95f   :  { %v659_v54 = vpop.permute.xlu1 %658 }
 0x960   :  { %v661_v55 = vadd.f32 %v659_v54, %v651_v53 }
 0x962   :  { %1740 = vtanh.f32 %v661_v55  ;;  %761 = vrot.lane.b32.xlu1 %v661_v55, %s1803_s3 }
 0x963   :  { %v670_v59 = vpop.permute.xlu1 %669 }
 0x96c   :  { %v1741_v56 = vpop.eup %1740 }
 0x96d   :  { %664 = vrot.lane.b32.xlu0 %v1741_v56, %s1805_s22  ;;  %v997_v56 = vrot.slane %v1953_v27, 6 }
 0x9d4   :  { %v762_v6 = vpop.permute.xlu1 %761 }
 0x9df   :  { %v665_v57 = vpop.permute.xlu0 %664 }
 0x9e0   :  { %v667_v58 = vmul.f32 %v1739_v50, %v665_v57 }
 0x9e2   :  { %v672_v60 = vmul.f32 %v670_v59, %v667_v58 }
 0x9e4   :  { %674 = vrot.lane.b32.xlu0 %v672_v60, %s1804_s6 }
 0xa56   :  { %v675_v61 = vpop.permute.xlu0 %674 }
 0xa57   :  { %1553 = vmatmul.mubr.msk.f32.vlgmr.msra.gmra.mrb[6].mxu0 %vm58_vm0, %v675_v61 }
 0xa58   :  { %1675 = vmatpush3.bf16.msra.mxu0 %v1922_v19  ;;  %1574 = vmatprep.mubr.msk.f32.mxu0 %vm1801_vm1, %v1802_v23 }
 0xa59   :  { %1676 = vmatprep.subr.bf16.mxu0 %v1800_v17 }
 0xa5c   :  { %1678 = vmatpush3.bf16.msra.mxu0 %v1937_v22 }
 0xa5d   :  { %1685 = vmatprep.subr.bf16.mxu0 %v1800_v17 }
 0xb2a   :  { %v744_v62 = vpop.f32.mrb[6].mxu0 }
 0xb2b   :  { %v745_v63 = vadd.f32 %v744_v62, %v1957_v31  ;;  %v1554_v0 = vpop.f32.mrb[7].mxu0 }
 0xb2d   :  { %v1398_v1 = vmul.f32 -1.442695, %v745_v63  ;;  %1742 = vtanh.f32 %v745_v63 }
 0xb2f   :  { %1744 = vpow2.f32 %v1398_v1 }
 0xb37   :  { %v1743_v2 = vpop.eup %1742 }
 0xb38   :  { %756 = vrot.lane.b32.xlu0 %v1743_v2, %s1803_s3 }
 0xb39   :  { %v1745_v3 = vpop.eup %1744 }
 0xb3a   :  { %v751_v4 = vadd.f32 1.0, %v1745_v3 }
 0xb3c   :  { %1746 = vrcp.f32 %v751_v4 }
 0xb46   :  { %v1747_v5 = vpop.eup %1746 }
 0xb47   :  { %v764_v7 = vmul.f32 %v1747_v5, %v762_v6 }
 0xb49   :  { %766 = vrot.lane.b32.xlu1 %v764_v7, %s1804_s6 }
 0xb4d   :  { %777 = vrot.lane.b32.xlu1 %v776_v8, %s1803_s3 }
 0xbaa   :  { %v757_v9 = vpop.permute.xlu0 %756 }
 0xbab   :  { %v759_v10 = vmul.f32 %v1747_v5, %v757_v9 }
 0xbbb   :  { %v767_v11 = vpop.permute.xlu1 %766 }
 0xbbc   :  { %v769_v12 = vadd.f32 %v767_v11, %v759_v10 }
 0xbbe   :  { %1748 = vtanh.f32 %v769_v12  ;;  %872 = vrot.lane.b32.xlu1 %v769_v12, %s1803_s3 }
 0xbbf   :  { %v778_v16 = vpop.permute.xlu1 %777 }
 0xbc8   :  { %v1749_v13 = vpop.eup %1748 }
 0xbc9   :  { %772 = vrot.lane.b32.xlu0 %v1749_v13, %s1805_s22 }
 0xc30   :  { %v873_v35 = vpop.permute.xlu1 %872 }
 0xc3b   :  { %v773_v14 = vpop.permute.xlu0 %772 }
 0xc3c   :  { %v775_v15 = vmul.f32 %v1747_v5, %v773_v14 }
 0xc3e   :  { %v780_v18 = vmul.f32 %v778_v16, %v775_v15  ;;  %v1107_v16 = vld [vmem:[%s2145_s7] sm:$0xff] }
 0xc40   :  { %782 = vrot.lane.b32.xlu0 %v780_v18, %s1804_s6  ;;  %v1108_v18 = vld [vmem:[%s2145_s7 + $0x8] sm:$0xff] }
 0xcb2   :  { %v783_v20 = vpop.permute.xlu0 %782 }
 0xcb3   :  { %1564 = vmatmul.mubr.msk.f32.vlgmr.msra.gmra.mrb[6].mxu1 %vm58_vm0, %v783_v20  ;;  %v1109_v20 = vld [vmem:[%s2145_s7 + $0x10] sm:$0xff] }
 0xcb4   :  { %1681 = vmatpush3.bf16.msra.mxu1 %v1922_v19  ;;  %1585 = vmatprep.mubr.msk.f32.mxu1 %vm1801_vm1, %v1802_v23 }
 0xcb5   :  { %1682 = vmatprep.subr.bf16.mxu1 %v1800_v17 }
 0xcb8   :  { %1684 = vmatpush3.bf16.msra.mxu1 %v1937_v22  ;;  %v887_v22 = vrot.slane %v1953_v27, 4  ;;  %v1005_v27 = vrot.slane %v1957_v31, 6 }
 0xcb9   :  { %1691 = vmatprep.subr.bf16.mxu1 %v1800_v17 }
 0xd86   :  { %v855_v24 = vpop.f32.mrb[6].mxu1 }
 0xd87   :  { %v856_v25 = vadd.f32 %v855_v24, %v785_v21  ;;  %v1565_v26 = vpop.f32.mrb[7].mxu1  ;;  %v1686_v21 = vpack.c.bf16 %v1108_v18, %v1107_v16  ;;  %v1110_v24 = vld [vmem:[%s2145_s7 + $0x18] sm:$0xff] }
 0xd89   :  { %v1400_v28 = vmul.f32 -1.442695, %v856_v25  ;;  %1750 = vtanh.f32 %v856_v25  ;;  %v1689_v25 = vpack.c.bf16 %v1110_v24, %v1109_v20 }
 0xd8b   :  { %1752 = vpow2.f32 %v1400_v28 }
 0xd93   :  { %v1751_v30 = vpop.eup %1750 }
 0xd94   :  { %867 = vrot.lane.b32.xlu0 %v1751_v30, %s1803_s3 }
 0xd95   :  { %v1753_v19 = vpop.eup %1752 }
 0xd96   :  { %v862_v32 = vadd.f32 1.0, %v1753_v19 }
 0xd98   :  { %1754 = vrcp.f32 %v862_v32  ;;  %v1195_v32 = vld [vmem:[%s2147_s9] sm:$0xff] }
 0xda2   :  { %v1755_v33 = vpop.eup %1754 }
 0xda3   :  { %v875_v36 = vmul.f32 %v1755_v33, %v873_v35  ;;  %v1197_v35 = vld [vmem:[%s2147_s9 + $0x10] sm:$0xff] }
 0xda5   :  { %877 = vrot.lane.b32.xlu1 %v875_v36, %s1804_s6 }
 0xda9   :  { %888 = vrot.lane.b32.xlu1 %v887_v22, %s1803_s3  ;;  %v1198_v22 = vld [vmem:[%s2147_s9 + $0x18] sm:$0xff] }
 0xe06   :  { %v868_v37 = vpop.permute.xlu0 %867 }
 0xe07   :  { %v870_v38 = vmul.f32 %v1755_v33, %v868_v37  ;;  %v1695_v37 = vpack.c.bf16 %v1198_v22, %v1197_v35 }
 0xe17   :  { %v878_v39 = vpop.permute.xlu1 %877 }
 0xe18   :  { %v880_v40 = vadd.f32 %v878_v39, %v870_v38  ;;  %v1283_v38 = vld [vmem:[%s2149_s11 + $0x8] sm:$0xff] }
 0xe1a   :  { %1756 = vtanh.f32 %v880_v40  ;;  %982 = vrot.lane.b32.xlu1 %v880_v40, %s1803_s3  ;;  %v1405_v40 = vld [vmem:[%s2146_s8] ss:$0 sm:$0xff] }
 0xe1b   :  { %v889_v43 = vpop.permute.xlu1 %888 }
 0xe24   :  { %v1757_v41 = vpop.eup %1756 }
 0xe25   :  { %883 = vrot.lane.b32.xlu0 %v1757_v41, %s1805_s22 }
 0xe8c   :  { %v983_v54 = vpop.permute.xlu1 %982 }
 0xe97   :  { %v884_v42 = vpop.permute.xlu0 %883 }
 0xe98   :  { %v886_v29 = vmul.f32 %v1755_v33, %v884_v42  ;;  %v1196_v33 = vld [vmem:[%s2147_s9 + $0x8] sm:$0xff] }
 0xe99   :  { %v1692_v36 = vpack.c.bf16 %v1196_v33, %v1195_v32 }
 0xe9a   :  { %v891_v44 = vmul.f32 %v889_v43, %v886_v29 }
 0xe9c   :  { %893 = vrot.lane.b32.xlu0 %v891_v44, %s1804_s6 }
 0xf0e   :  { %v894_v45 = vpop.permute.xlu0 %893 }
 0xf0f   :  { %1575 = vmatmul.mubr.msk.f32.vlgmr.msra.gmra.mrb[8].mxu0 %vm58_vm0, %v894_v45  ;;  %v1284_v45 = vld [vmem:[%s2149_s11 + $0x10] sm:$0xff] }
 0xf10   :  { %1596 = vmatprep.mubr.msk.f32.mxu0 %vm1801_vm1, %v1802_v23  ;;  %1687 = vmatpush3.bf16.msra.mxu0 %v1686_v21 }
 0xf11   :  { %1688 = vmatprep.subr.bf16.mxu0 %v1800_v17 }
 0xf14   :  { %1690 = vmatpush3.bf16.msra.mxu0 %v1689_v25 }
 0xf15   :  { %1697 = vmatprep.subr.bf16.mxu0 %v1800_v17 }
 0xfe2   :  { %v965_v47 = vpop.f32.mrb[8].mxu0 }
 0xfe3   :  { %v966_v48 = vadd.f32 %v965_v47, %v895_v46  ;;  %v1576_v49 = vpop.f32.mrb[9].mxu0  ;;  %v1407_v47 = vld [vmem:[%s2148_s10] ss:$0 sm:$0xff] }
 0xfe5   :  { %v1402_v50 = vmul.f32 -1.442695, %v966_v48  ;;  %1758 = vtanh.f32 %v966_v48 }
 0xfe7   :  { %1760 = vpow2.f32 %v1402_v50 }
 0xfef   :  { %v1759_v51 = vpop.eup %1758 }
 0xff0   :  { %977 = vrot.lane.b32.xlu0 %v1759_v51, %s1803_s3 }
 0xff1   :  { %v1761_v52 = vpop.eup %1760 }
 0xff2   :  { %v972_v34 = vadd.f32 1.0, %v1761_v52 }
 0xff4   :  { %1762 = vrcp.f32 %v972_v34  ;;  %v1409_v34 = vld [vmem:[%s2150_s12] ss:$0 sm:$0xff] }
 0xffe   :  { %v1763_v53 = vpop.eup %1762 }
 0xfff   :  { %v985_v55 = vmul.f32 %v1763_v53, %v983_v54 }
0x1001   :  { %987 = vrot.lane.b32.xlu1 %v985_v55, %s1804_s6 }
0x1005   :  { %998 = vrot.lane.b32.xlu1 %v997_v56, %s1803_s3 }
0x1062   :  { %v978_v57 = vpop.permute.xlu0 %977 }
0x1063   :  { %v980_v58 = vmul.f32 %v1763_v53, %v978_v57 }
0x1073   :  { %v988_v59 = vpop.permute.xlu1 %987 }
0x1074   :  { %v990_v60 = vadd.f32 %v988_v59, %v980_v58 }
0x1076   :  { %1764 = vtanh.f32 %v990_v60  ;;  %1092 = vrot.lane.b32.xlu1 %v990_v60, %s1803_s3 }
0x1077   :  { %v999_v0 = vpop.permute.xlu1 %998 }
0x1080   :  { %v1765_v61 = vpop.eup %1764 }
0x1081   :  { %993 = vrot.lane.b32.xlu0 %v1765_v61, %s1805_s22 }
0x10e8   :  { %v1093_v11 = vpop.permute.xlu1 %1092 }
0x10f3   :  { %v994_v62 = vpop.permute.xlu0 %993 }
0x10f4   :  { %v996_v63 = vmul.f32 %v1763_v53, %v994_v62 }
0x10f6   :  { %v1001_v1 = vmul.f32 %v999_v0, %v996_v63 }
0x10f8   :  { %1003 = vrot.lane.b32.xlu0 %v1001_v1, %s1804_s6 }
0x116a   :  { %v1004_v2 = vpop.permute.xlu0 %1003 }
0x116b   :  { %1586 = vmatmul.mubr.msk.f32.vlgmr.msra.gmra.mrb[8].mxu1 %vm58_vm0, %v1004_v2 }
0x116c   :  { %1607 = vmatprep.mubr.msk.f32.mxu1 %vm1801_vm1, %v1802_v23  ;;  %1693 = vmatpush3.bf16.msra.mxu1 %v1692_v36 }
0x116d   :  { %1694 = vmatprep.subr.bf16.mxu1 %v1800_v17 }
0x1170   :  { %1696 = vmatpush3.bf16.msra.mxu1 %v1695_v37 }
0x123e   :  { %v1075_v3 = vpop.f32.mrb[8].mxu1 }
0x123f   :  { %v1076_v4 = vadd.f32 %v1075_v3, %v1005_v27  ;;  %v1587_v5 = vpop.f32.mrb[9].mxu1 }
0x1241   :  { %v1404_v6 = vmul.f32 -1.442695, %v1076_v4  ;;  %1766 = vtanh.f32 %v1076_v4 }
0x1243   :  { %1768 = vpow2.f32 %v1404_v6 }
0x124b   :  { %v1767_v7 = vpop.eup %1766 }
0x124c   :  { %1087 = vrot.lane.b32.xlu0 %v1767_v7, %s1803_s3 }
0x124d   :  { %v1769_v8 = vpop.eup %1768 }
0x124e   :  { %v1082_v9 = vadd.f32 1.0, %v1769_v8 }
0x1250   :  { %1770 = vrcp.f32 %v1082_v9 }
0x125a   :  { %v1771_v10 = vpop.eup %1770 }
0x125b   :  { %v1095_v12 = vmul.f32 %v1771_v10, %v1093_v11 }
0x125d   :  { %1097 = vrot.lane.b32.xlu1 %v1095_v12, %s1804_s6 }
0x12be   :  { %v1088_v13 = vpop.permute.xlu0 %1087 }
0x12bf   :  { %v1090_v14 = vmul.f32 %v1771_v10, %v1088_v13 }
0x12cf   :  { %v1098_v31 = vpop.permute.xlu1 %1097 }
0x12d0   :  { %v1100_v15 = vadd.f32 %v1098_v31, %v1090_v14 }
0x12d2   :  { %1772 = vtanh.f32 %v1100_v15 }
0x12dc   :  { %v1773_v26 = vpop.eup %1772 }
0x12dd   :  { %1103 = vrot.lane.b32.xlu0 %v1773_v26, %s1805_s22 }
0x134f   :  { %v1104_v28 = vpop.permute.xlu0 %1103 }
0x1350   :  { %v1106_v30 = vmul.f32 %v1771_v10, %v1104_v28 }
0x1352   :  { %1119 = vrot.lane.b32.xlu1 %v1106_v30, %s1804_s6 }
0x13c4   :  { %v1120_v19 = vpop.permute.xlu1 %1119 }
0x13c5   :  { %1597 = vmatmul.mubr.msk.f32.vlgmr.msra.gmra.mrb[10].mxu0 %vm58_vm0, %v1120_v19 }
0x13c6   :  { %1618 = vmatprep.mubr.msk.f32.mxu0 %vm1801_vm1, %v1802_v23  ;;  %v1282_v23 = vld [vmem:[%s2149_s11] sm:$0xff] }
0x13c7   :  { %v1698_v39 = vpack.c.bf16 %v1283_v38, %v1282_v23 }
0x13c9   :  { %1699 = vmatpush3.bf16.msra.mxu0 %v1698_v39 }
0x13ca   :  { %1700 = vmatprep.subr.bf16.mxu0 %v1800_v17  ;;  %v1285_v17 = vld [vmem:[%s2149_s11 + $0x18] sm:$0xff]  ;;  %s1806_s11 = smov [#allocation2]  }
0x13cb   :  { %v1701_v46 = vpack.c.bf16 %v1285_v17, %v1284_v45  ;;  %s1375_s25 = sshll.u32 %s1806_s11, 4  ;;  %s1376_s25 = int_to_ptr.vmem [resolvable:$true] %s1375_s25 }
0x13cc   :  { %s1776_s10 = scalar_lea.vmem %s1376_s25, 32  ;;  %p1781_p1 = scmp.lt.s32.totalorder %s1376_s25, %s1376_s25 }
0x13cd   :  { %1702 = vmatpush3.bf16.msra.mxu0 %v1701_v46  ;;  %p1777_p0 = scmp.ne.s32.totalorder %s1376_s25, %s1776_s10  ;;  %p1782_p2 = scmp.lt.s32.totalorder %s1776_s10, %s1776_s10 }
0x13cf   :  { %p1783_p3 = por %p1782_p2, %p1781_p1 }
0x13d1   :  { %p1784_p4 = pnand %p1783_p3, %p1777_p0 }
0x1498   :  { %v1189_v41 = vpop.f32.mrb[10].mxu0 }
0x1499   :  { %v1190_v42 = vadd.f32 %v1405_v40, %v1189_v41  ;;  %v1598_v29 = vpop.f32.mrb[11].mxu0 }
0x149b   :  { %v1194_v43 = vmax.f32 %v1190_v42, 0.0  ;;  %1774 = vtanh.f32 %v1190_v42 }
0x149d   :  { %1207 = vrot.lane.b32.xlu0 %v1194_v43, %s1803_s3 }
0x14a5   :  { %v1775_v51 = vpop.eup %1774 }
0x150f   :  { %v1208_v44 = vpop.permute.xlu0 %1207 }
0x1510   :  { %1608 = vmatmul.mubr.msk.f32.vlgmr.msra.gmra.mrb[10].mxu1 %vm58_vm0, %v1208_v44 }
0x15e3   :  { %v1277_v48 = vpop.f32.mrb[10].mxu1 }
0x15e4   :  { %v1278_v49 = vadd.f32 %v1407_v47, %v1277_v48  ;;  %v1609_v50 = vpop.f32.mrb[11].mxu1 }
0x15e6   :  { %v1281_v52 = vadd.f32 %v1775_v51, %v1278_v49 }
0x15e8   :  { %1619 = vmatmul.mubr.msk.f32.vlgmr.msra.gmra.mrb[12].mxu0 %vm58_vm0, %v1281_v52 }
0x16bb   :  { %v1362_v53 = vpop.f32.mrb[12].mxu0 }
0x16bc   :  { %v1363_v54 = vadd.f32 %v1409_v34, %v1362_v53  ;;  %v1620_v55 = vpop.f32.mrb[13].mxu0 }
0x16be   :  { %v1366_v56 = vmax.f32 %v1363_v54, 0.0 }
0x16c0   :  { %1368 = vst.msk [vmem:[#allocation2] sm:$0x3] %vm1367_vm2, %v1366_v56 }
0x16c1   :  { %1787 = shalt.err (!%p1784_p4)
}
0x16c2   :  { %s1788_s12 = scalar_lea.hbm %s2151_s13, 32 }
0x16c3   :  { %p1789_p5 = scmp.ne.s32.totalorder %s2151_s13, %s1788_s12  ;;  %p1792_p6 = scmp.lt.u32.totalorder %s1788_s12, %s2151_s13 }
0x16c5   :  { %p1794_p7 = pnand %p1792_p6, %p1789_p5 }
0x16c7   :  { %1797 = shalt.err (!%p1794_p7)
}
0x16c8   :  { %1378 = dma.vmem_to_hbm [thread:$0]  %s1376_s25, 32, %s2151_s13, [#allocation3]  }
0x16c9   :  { %1798 = dma.done.wait [#allocation3], 32  }
0x16ca   :  { %1799 = vsyncadd [#allocation3], 4294967264 }
0x16cb   :  { %1382 = vsyncpa [#allocation3], 1 }

</bundles_post_ra>
